<compile_context>
chip_gen: v6e
topology: v6e:2x2x1
jax: 0.10.0
libtpu: 0.0.40
codegen_flags: <defaults>
</compile_context>

<pallas_src>
import jax
import jax.numpy as jnp
from jax.experimental import pallas as pl
from jax.experimental.pallas import tpu as pltpu


def _mlp_kernel(x_ref, w1_ref, b1_ref, w2_ref, b2_ref, w3_ref, b3_ref, o_ref):
    """One batch tile, everything resident in VMEM.

    x_ref : (D, bt)  bf16  -- x^T tile, batch on lanes
    w1_ref: (D, D)   bf16  -- PyTorch layout (out, in)
    b1_ref: (D, 1)   f32
    w2_ref: (30, D)  bf16
    b2_ref: (30, 1)  f32
    w3_ref: (30, 1)  f32   -- PyTorch W3 (1, 30) stored as a column
    b3_ref: (1, 1)   f32
    o_ref : (1, bt)  f32   -- sigmoid(z)^T, lane-dense output slab
    """
    x = x_ref[...]                                                  # bf16 (D, bt)

    # Layer 1: h1^T = relu(W1 @ x^T + b1)      (MXU, bf16 in / f32 accumulate)
    h1 = jnp.dot(w1_ref[...], x, preferred_element_type=jnp.float32) + b1_ref[...]
    h1 = jnp.maximum(h1, 0.0)
    # TODO(synk): Dropout(p=0.2) is identity (eval mode); training-mode dropout
    # (pltpu.prng_seed + pltpu.stateful_bernoulli + 1/(1-p) scaling) not implemented.

    # Layer 2: h2^T = relu(W2 @ h1^T + b2)     (MXU, bf16 in / f32 accumulate)
    h2 = jnp.dot(w2_ref[...], h1.astype(jnp.bfloat16),
                 preferred_element_type=jnp.float32) + b2_ref[...]
    h2 = jnp.maximum(h2, 0.0)

    # Layer 3 (out_features == 1): VPU multiply + sublane reduce (XLU) rather
    # than a nearly-empty N=1 MXU matmul.
    z = jnp.sum(h2 * w3_ref[...], axis=0, keepdims=True) + b3_ref[...]   # (1, bt) f32

    # Sigmoid: exp and approximate reciprocal both run in the EUP slot.
    o_ref[...] = pl.reciprocal(1.0 + jnp.exp(-z), approx=True)


def _pick_batch_tile(batch):
    """Largest lane-dense tile (multiple of 128) that still gives >= 2 grid
    steps (v7x megacore); otherwise fall back to a single whole-batch block."""
    if batch % 128 == 0:
        for t in (1024, 512, 256, 128):
            if batch % t == 0 and batch // t >= 2:
                return t
        return 128
    return batch  # small / odd batch: one full-extent block (still legal)


def net_forward(x, params, *, batch_tile=None):
    """MLP forward pass as a Pallas TPU kernel.

    x: (B, D) float32; returns (B, 1) float32 probabilities.
    params: w1 (D,D) bf16, b1 (D,1) f32, w2 (30,D) bf16, b2 (30,1) f32,
            w3 (30,1) f32, b3 (1,1) f32   -- weights in PyTorch (out, in) layout.
    """
    B, D = x.shape
    w1, b1, w2, b2, w3, b3 = (params[k] for k in ("w1", "b1", "w2", "b2", "w3", "b3"))
    H2 = w2.shape[0]  # 30

    if batch_tile is None:
        batch_tile = _pick_batch_tile(B)
    assert B % batch_tile == 0, "batch must be divisible by batch_tile"
    # Lane-dense output blocks require batch_tile % 128 == 0 unless full-batch.
    assert batch_tile % 128 == 0 or batch_tile == B
    grid = (B // batch_tile,)

    # Layout plumbing (not compute): put batch on the lane axis, bf16 for MXU.
    x_t = x.T.astype(jnp.bfloat16)                                  # (D, B)

    out_t = pl.pallas_call(
        _mlp_kernel,
        out_shape=jax.ShapeDtypeStruct((1, B), jnp.float32),
        grid_spec=pltpu.PrefetchScalarGridSpec(
            num_scalar_prefetch=0,
            grid=grid,
            in_specs=[
                # activations: tiled along the (lane) batch axis
                pl.BlockSpec((D, batch_tile), lambda i: (0, i)),
                # weights / biases: full arrays, resident across all steps
                pl.BlockSpec((D, D), lambda i: (0, 0)),
                pl.BlockSpec((D, 1), lambda i: (0, 0)),
                pl.BlockSpec((H2, D), lambda i: (0, 0)),
                pl.BlockSpec((H2, 1), lambda i: (0, 0)),
                pl.BlockSpec((H2, 1), lambda i: (0, 0)),
                pl.BlockSpec((1, 1), lambda i: (0, 0)),
            ],
            out_specs=pl.BlockSpec((1, batch_tile), lambda i: (0, i)),
        ),
        compiler_params=pltpu.CompilerParams(
            # Batch axis is embarrassingly parallel -> megacore split on v7x.
            dimension_semantics=("parallel",),
            # D=32 here so VMEM is trivial; for large D (>= ~1024) either raise
            # vmem_limit_bytes or K-tile W1 over a trailing "arbitrary" axis
            # (v5e default scoped VMEM is 16 MiB; v7x physical VMEM is 64 MiB).
        ),
    )(x_t, w1, b1, w2, b2, w3, b3)

    return out_t.reshape(B, 1)


def init_params(key, input_dim, hidden2=30):
    """Deterministic parameter init matching Net(input_dim) shapes (PyTorch (out,in) layout)."""
    k1, k2, k3, k4, k5, k6 = jax.random.split(key, 6)
    scale = 0.1
    return {
        "w1": (scale * jax.random.normal(k1, (input_dim, input_dim), jnp.float32)).astype(jnp.bfloat16),
        "b1": scale * jax.random.normal(k2, (input_dim, 1), jnp.float32),
        "w2": (scale * jax.random.normal(k3, (hidden2, input_dim), jnp.float32)).astype(jnp.bfloat16),
        "b2": scale * jax.random.normal(k4, (hidden2, 1), jnp.float32),
        "w3": scale * jax.random.normal(k5, (hidden2, 1), jnp.float32),
        "b3": scale * jax.random.normal(k6, (1, 1), jnp.float32),
    }


def net_forward_ref(x, p):
    """Plain-JAX reference (same bf16-matmul / f32-accumulate math, eval-mode dropout)."""
    h1 = jnp.maximum(
        jnp.dot(x.astype(jnp.bfloat16), p["w1"].T, preferred_element_type=jnp.float32)
        + p["b1"].reshape(1, -1), 0.0)
    h2 = jnp.maximum(
        jnp.dot(h1.astype(jnp.bfloat16), p["w2"].T, preferred_element_type=jnp.float32)
        + p["b2"].reshape(1, -1), 0.0)
    z = h2 @ p["w3"] + p["b3"].reshape(1, 1)
    return jax.nn.sigmoid(z)


if __name__ == "__main__":
    # 256 rows -> two lane-dense tiles of 128 -> >=2 parallel grid steps (v7x).
    B, D = 256, 32
    key = jax.random.PRNGKey(0)
    kx, kp = jax.random.split(key)
    x = jax.random.normal(kx, (B, D), jnp.float32)
    params = init_params(kp, D)

    out = jax.block_until_ready(net_forward(x, params))
    ref = net_forward_ref(x, params)

    assert out.shape == (B, 1), out.shape
    assert jnp.allclose(out, ref, atol=1e-2, rtol=1e-2), (
        "mismatch vs reference, max abs err = %f" % float(jnp.max(jnp.abs(out - ref))))

    print("KERNEL_OK")
</pallas_src>

<mosaic_0001>
module attributes {stable_mosaic.version = 11 : i64} {
  func.func @_mlp_kernel(%arg0: i32, %arg1: memref<32x128xbf16, #tpu.memory_space<vmem>>, %arg2: memref<32x32xbf16, #tpu.memory_space<vmem>>, %arg3: memref<32x1xf32, #tpu.memory_space<vmem>>, %arg4: memref<30x32xbf16, #tpu.memory_space<vmem>>, %arg5: memref<30x1xf32, #tpu.memory_space<vmem>>, %arg6: memref<30x1xf32, #tpu.memory_space<vmem>>, %arg7: memref<1x1xf32, #tpu.memory_space<vmem>>, %arg8: memref<1x128xf32, #tpu.memory_space<vmem>>) attributes {dimension_semantics = [#tpu.dimension_semantics<parallel>], iteration_bounds = array<i64: 2>, scalar_prefetch = 0 : i64, scratch_operands = 0 : i64, tpu.core_type = #tpu.core_type<tc>, window_params = [{transform_indices = @transform_0, window_bounds = array<i64: 32, 128>}, {pipeline_mode = #tpu.pipeline_mode<synchronous>, transform_indices = @transform_1, window_bounds = array<i64: 32, 32>}, {pipeline_mode = #tpu.pipeline_mode<synchronous>, transform_indices = @transform_2, window_bounds = array<i64: 32, 1>}, {pipeline_mode = #tpu.pipeline_mode<synchronous>, transform_indices = @transform_3, window_bounds = array<i64: 30, 32>}, {pipeline_mode = #tpu.pipeline_mode<synchronous>, transform_indices = @transform_4, window_bounds = array<i64: 30, 1>}, {pipeline_mode = #tpu.pipeline_mode<synchronous>, transform_indices = @transform_5, window_bounds = array<i64: 30, 1>}, {pipeline_mode = #tpu.pipeline_mode<synchronous>, transform_indices = @transform_6, window_bounds = array<i64: 1, 1>}, {transform_indices = @transform_7, window_bounds = array<i64: 1, 128>}]} {
    %c0 = arith.constant 0 : index
    %c0_0 = arith.constant 0 : index
    %0 = vector.load %arg1[%c0, %c0_0] : memref<32x128xbf16, #tpu.memory_space<vmem>>, vector<32x128xbf16>
    %c0_1 = arith.constant 0 : index
    %c0_2 = arith.constant 0 : index
    %1 = vector.load %arg2[%c0_1, %c0_2] : memref<32x32xbf16, #tpu.memory_space<vmem>>, vector<32x32xbf16>
    %cst = arith.constant dense<0.000000e+00> : vector<32x128xf32>
    %2 = tpu.matmul %1, %0, %cst {dimension_numbers = #tpu.dot_dimension_numbers<[1], [0], [0], [1], [0, 0, 1, 1], [], []>} : vector<32x32xbf16>, vector<32x128xbf16>, vector<32x128xf32> -> vector<32x128xf32>
    %c0_3 = arith.constant 0 : index
    %c0_4 = arith.constant 0 : index
    %3 = vector.load %arg3[%c0_3, %c0_4] : memref<32x1xf32, #tpu.memory_space<vmem>>, vector<32x1xf32>
    %4 = vector.broadcast %3 : vector<32x1xf32> to vector<32x128xf32>
    %5 = arith.addf %2, %4 : vector<32x128xf32>
    %cst_5 = arith.constant 0.000000e+00 : f32
    %6 = vector.broadcast %cst_5 : f32 to vector<32x128xf32>
    %7 = arith.maximumf %5, %6 : vector<32x128xf32>
    %c0_6 = arith.constant 0 : index
    %c0_7 = arith.constant 0 : index
    %8 = vector.load %arg4[%c0_6, %c0_7] : memref<30x32xbf16, #tpu.memory_space<vmem>>, vector<30x32xbf16>
    %9 = arith.truncf %7 : vector<32x128xf32> to vector<32x128xbf16>
    %cst_8 = arith.constant dense<0.000000e+00> : vector<30x128xf32>
    %10 = tpu.matmul %8, %9, %cst_8 {dimension_numbers = #tpu.dot_dimension_numbers<[1], [0], [0], [1], [0, 0, 1, 1], [], []>} : vector<30x32xbf16>, vector<32x128xbf16>, vector<30x128xf32> -> vector<30x128xf32>
    %c0_9 = arith.constant 0 : index
    %c0_10 = arith.constant 0 : index
    %11 = vector.load %arg5[%c0_9, %c0_10] : memref<30x1xf32, #tpu.memory_space<vmem>>, vector<30x1xf32>
    %12 = vector.broadcast %11 : vector<30x1xf32> to vector<30x128xf32>
    %13 = arith.addf %10, %12 : vector<30x128xf32>
    %cst_11 = arith.constant 0.000000e+00 : f32
    %14 = vector.broadcast %cst_11 : f32 to vector<30x128xf32>
    %15 = arith.maximumf %13, %14 : vector<30x128xf32>
    %c0_12 = arith.constant 0 : index
    %c0_13 = arith.constant 0 : index
    %16 = vector.load %arg6[%c0_12, %c0_13] : memref<30x1xf32, #tpu.memory_space<vmem>>, vector<30x1xf32>
    %17 = vector.broadcast %16 : vector<30x1xf32> to vector<30x128xf32>
    %18 = arith.mulf %15, %17 : vector<30x128xf32>
    %cst_14 = arith.constant dense<0.000000e+00> : vector<128xf32>
    %19 = vector.multi_reduction <add>, %18, %cst_14 [0] : vector<30x128xf32> to vector<128xf32>
    %20 = vector.shape_cast %19 : vector<128xf32> to vector<1x128xf32>
    %c0_15 = arith.constant 0 : index
    %c0_16 = arith.constant 0 : index
    %21 = vector.load %arg7[%c0_15, %c0_16] : memref<1x1xf32, #tpu.memory_space<vmem>>, vector<1x1xf32>
    %22 = vector.broadcast %21 : vector<1x1xf32> to vector<1x128xf32>
    %23 = arith.addf %20, %22 : vector<1x128xf32>
    %cst_17 = arith.constant 0.000000e+00 : f32
    %24 = vector.broadcast %cst_17 : f32 to vector<1x128xf32>
    %25 = arith.subf %24, %23 : vector<1x128xf32>
    %26 = math.exp %25 : vector<1x128xf32>
    %cst_18 = arith.constant 1.000000e+00 : f32
    %27 = vector.broadcast %cst_18 : f32 to vector<1x128xf32>
    %28 = arith.addf %27, %26 : vector<1x128xf32>
    %29 = tpu.reciprocal %28 {approx = true} : vector<1x128xf32> -> vector<1x128xf32>
    %c0_19 = arith.constant 0 : index
    %c0_20 = arith.constant 0 : index
    %30 = vector.load %arg8[%c0_19, %c0_20] : memref<1x128xf32, #tpu.memory_space<vmem>>, vector<1x128xf32>
    tpu.vector_store %arg8[%c0_19, %c0_20], %29 {strides = array<i32>} : memref<1x128xf32, #tpu.memory_space<vmem>>, vector<1x128xf32>,
    return
  }
  func.func @transform_0(%arg0: i32) -> (i32, i32) {
    %c0_i32 = arith.constant 0 : i32
    %c0_i32_0 = arith.constant 0 : i32
    return %c0_i32, %arg0 : i32, i32
  }
  func.func @transform_1(%arg0: i32) -> (i32, i32) {
    %c0_i32 = arith.constant 0 : i32
    %c0_i32_0 = arith.constant 0 : i32
    %c0_i32_1 = arith.constant 0 : i32
    return %c0_i32, %c0_i32_0 : i32, i32
  }
  func.func @transform_2(%arg0: i32) -> (i32, i32) {
    %c0_i32 = arith.constant 0 : i32
    %c0_i32_0 = arith.constant 0 : i32
    %c0_i32_1 = arith.constant 0 : i32
    return %c0_i32, %c0_i32_0 : i32, i32
  }
  func.func @transform_3(%arg0: i32) -> (i32, i32) {
    %c0_i32 = arith.constant 0 : i32
    %c0_i32_0 = arith.constant 0 : i32
    %c0_i32_1 = arith.constant 0 : i32
    return %c0_i32, %c0_i32_0 : i32, i32
  }
  func.func @transform_4(%arg0: i32) -> (i32, i32) {
    %c0_i32 = arith.constant 0 : i32
    %c0_i32_0 = arith.constant 0 : i32
    %c0_i32_1 = arith.constant 0 : i32
    return %c0_i32, %c0_i32_0 : i32, i32
  }
  func.func @transform_5(%arg0: i32) -> (i32, i32) {
    %c0_i32 = arith.constant 0 : i32
    %c0_i32_0 = arith.constant 0 : i32
    %c0_i32_1 = arith.constant 0 : i32
    return %c0_i32, %c0_i32_0 : i32, i32
  }
  func.func @transform_6(%arg0: i32) -> (i32, i32) {
    %c0_i32 = arith.constant 0 : i32
    %c0_i32_0 = arith.constant 0 : i32
    %c0_i32_1 = arith.constant 0 : i32
    return %c0_i32, %c0_i32_0 : i32, i32
  }
  func.func @transform_7(%arg0: i32) -> (i32, i32) {
    %c0_i32 = arith.constant 0 : i32
    %c0_i32_0 = arith.constant 0 : i32
    return %c0_i32, %arg0 : i32, i32
  }
}

</mosaic_0001>

<bundles_post_ra>
// kernel: tpu_custom_call.1
= control target key start
LH: loop header
LB: loop body
LE: loop exit
PB: predicated region body
PF: predicated region fallthrough
CT: control target
= control target key end

     0   :  { %s1035_s0 = inlined_call_operand.vmem [shape: bf16[32,256], index: 0, kind: input, shape index: {}]   ;;  %s1036_s1 = inlined_call_operand.vmem [shape: bf16[32,32], index: 1, kind: input, shape index: {}]   ;;  %s1037_s2 = inlined_call_operand.vmem [shape: f32[32,1], index: 2, kind: input, shape index: {}]   ;;  %s1038_s3 = inlined_call_operand.vmem [shape: bf16[30,32], index: 3, kind: input, shape index: {}]   ;;  %s1039_s4 = inlined_call_operand.vmem [shape: f32[30,1], index: 4, kind: input, shape index: {}]   ;;  %s1040_s5 = inlined_call_operand.vmem [shape: f32[30,1], index: 5, kind: input, shape index: {}]   ;;  %s1041_s6 = inlined_call_operand.<no memory space> [shape: f32[1,1], index: 6, kind: input, shape index: {}]   ;;  %s1042_s7 = inlined_call_operand.hbm [shape: f32[1,256], index: 7, kind: output, shape index: {}]  }
   0x1   :  { %v12_v0 = vstv %s1041_s6 }
   0x2   :  { %13 = vst [vmem:[#allocation2] sm:$0x1] %v12_v0 }
   0x3   :  { %14 = vsyncpa [#allocation5], 0 }
   0x4   :  { %16 = vsyncpa [#allocation5 + $0x1], 0  ;;  %s880_s26 = smov 0   ;;  %s882_s27 = smov 0  }
   0x5   :  { %s884_s28 = smov 0   ;;  %s886_s29 = smov 0  }
   0x6 LB: > { %s676_s6 = sadd.s32 4294967295, %s833_s29   ;;  %s677_s30 = sadd.s32 4294967294, %s833_s29   ;;  %s833_s29 = sphi %s886_s29, %s1048_s29   ;;  %s829_s28 = sphi %s884_s28, %s1047_s28   ;;  %s825_s27 = sphi %s882_s27, %s1046_s27   ;;  %s821_s26 = sphi %s880_s26, %s1045_s26  }
   0x7   : > { %s903_s8 = sadd.s32 1, %s833_s29   ;;  %s29_s9 = sadd.s32 1, %s829_s28 }
   0x8   : > { %s26_s10 = ssub.s32 %s833_s29, %s903_s8  ;;  %p36_p0 = scmp.ne.s32.totalorder %s829_s28, %s825_s27 }
   0x9   : > { %p27_p1 = scmp.eq.s32.totalorder %s26_s10, 0  ;;  %p37_p2 = scmp.eq.s32.totalorder %s833_s29, 0 }
   0xa   : > { %p192_p3 = scmp.eq.s32.totalorder %s676_s6, 1  ;;  %p197_p4 = scmp.ne.s32.totalorder %s825_s27, %s821_s26 }
   0xb   : > { %s916_s11 = scalar_select %p27_p1, %s829_s28, %s29_s9  }
   0xc   : > { %p38_p5 = por %p37_p2, %p36_p0  ;;  %p918_p6 = por %p192_p3, %p36_p0 }
   0xd   : > { %p198_p7 = scmp.eq.s32.totalorder %s677_s30, 1  ;;  %p679_p9 = scmp.ge.s32.totalorder %s833_s29, 2 }
   0xf   : > { %p922_p8 = por %p198_p7, %p197_p4  ;;  %232 = sbr.rel (%p679_p9) target bundleno = 26 (0x1a), region = 40 }
  0x14   : > { %235 = sbr.rel (!%p38_p5) target bundleno = 26 (0x1a), region = 44  ;;  %s237_s14 = sand.u32 (%p38_p5), 1, %s829_s28  }
  0x15   : > { %s681_s15 = sshll.u32 (%p38_p5), %s833_s29, 2  ;;  %s680_s16 = sshll.u32 (%p38_p5), %s237_s14, 4 }
  0x16   : > { %s241_s19 = scalar_lea.vmem (%p38_p5), %s1035_s0, %s681_s15  ;;  %s239_s20 = scalar_lea.vmem (%p38_p5), [#allocation3], %s680_s16 }
  0x17   : > { %v258_v1 = vld [vmem:[%s241_s19] sm:$0xf] (%p38_p5)  ;;  %v260_v2 = vld [vmem:[%s241_s19 + $0x8] sm:$0xf] (%p38_p5)  ;;  %v262_v3 = vld [vmem:[%s241_s19 + $0x10] sm:$0xf] (%p38_p5) }
  0x18   : > { %259 = vst [vmem:[%s239_s20] sm:$0xf] (%p38_p5), %v258_v1  ;;  %261 = vst [vmem:[%s239_s20 + $0x4] sm:$0xf] (%p38_p5), %v260_v2  ;;  %v264_v4 = vld [vmem:[%s241_s19 + $0x18] sm:$0xf] (%p38_p5) }
  0x19   : > { %263 = vst [vmem:[%s239_s20 + $0x8] sm:$0xf] %v262_v3  ;;  %265 = vst [vmem:[%s239_s20 + $0xc] sm:$0xf] %v264_v4 }
  0x1a PF: > { %p682_p10 = scmp.ge.s32.totalorder %s833_s29, 1  ;;  %p296_p11 = scmp.lt.s32.totalorder %s833_s29, 3 }
  0x1c   : > { %p297_p12 = pnand %p682_p10, %p296_p11 }
  0x1d   : > { %s937_s21 = sand.u32 (!%p297_p12), 1, %s825_s27   ;;  %s694_s10 = sshll.u32 (!%p297_p12), %s676_s6, 4 }
  0x1e   : > { %300 = sbr.rel (%p297_p12) target bundleno = 529 (0x211), region = 85  ;;  %s683_s24 = sshll.u32 (!%p297_p12), %s937_s21, 4 }
  0x1f   : > { %s305_s9 = scalar_lea.vmem (!%p297_p12), [#allocation3], %s683_s24  ;;  %s332_s14 = scalar_lea.vmem (!%p297_p12), [#allocation4], %s937_s21 }
  0x20   : > { %s616_s15 = sshll.u32 (!%p297_p12), %s332_s14, 4  ;;  %s998_s18 = scalar_lea.hbm (!%p297_p12), %s1042_s7, %s694_s10  ;;  %s617_s15 = int_to_ptr.vmem [resolvable:$true] %s616_s15 }
  0x21   : > { %s604_s19 = scalar_lea.sflag (!%p297_p12), [#allocation5], %s937_s21  ;;  %s773_s20 = scalar_lea.vmem (!%p297_p12), %s617_s15, 16 }
  0x22   : > { %p774_p13 = scmp.ne.s32.totalorder (!%p297_p12), %s617_s15, %s773_s20  ;;  %s836_s22 = smov (!%p297_p12), [#allocation4]  }
  0x23   : > { %v765_v5 = vld [vmem:[%s1036_s1] sm:$0xff]   ;;  %vm388_vm0 = vcmask 261120   ;;  %v344_v6 = vld [vmem:[%s1037_s2 + $0x10] sm:$0xff]  ;;  %v835_v8 = vmov 0   ;;  %v345_v10 = vld [vmem:[%s1037_s2 + $0x18] sm:$0xff]  ;;  %vm577_vm1 = vcmask 1045504  }
  0x24   : > { %709 = vmatprep.mubr.msk.bf16.mxu0 %vm388_vm0, %v765_v5  ;;  %v763_v7 = vld [vmem:[%s305_s9 + $0x8] sm:$0xff]   ;;  %761 = vset.pattern.permute.xlu0 %v835_v8  ;;  %v764_v9 = vld [vmem:[%s305_s9] sm:$0xff]   ;;  %p775_p0 = pnand %p774_p13, %p918_p6  ;;  %s777_s23 = sshll.u32 %s836_s22, 4  ;;  %s778_s23 = int_to_ptr.vmem [resolvable:$false] %s777_s23 }
  0x25   : > { %762 = vset.pattern.permute.xlu1 %v835_v8  ;;  %358 = vperm.xlu0 %761, %v344_v6   ;;  %v342_v11 = vld [vmem:[%s1037_s2] sm:$0xff]  ;;  %v343_v12 = vld [vmem:[%s1037_s2 + $0x8] sm:$0xff]  ;;  %v456_v16 = vld [vmem:[%s1039_s4 + $0x10] sm:$0xff]  ;;  %v592_v6 = vlaneseq  ;;  %s779_s6 = scalar_lea.vmem %s778_s23, 32  ;;  %p780_p2 = scmp.lt.s32.totalorder %s617_s15, %s778_s23 }
  0x26   : > { %705 = vmatprep.subr.bf16.mxu0 %v763_v7  ;;  %348 = vperm.xlu1 %762, %v342_v11   ;;  %v766_v13 = vld [vmem:[%s1036_s1 + $0x8] sm:$0xff]   ;;  %v454_v14 = vld [vmem:[%s1039_s4] sm:$0xff]  ;;  %v457_v17 = vld [vmem:[%s1039_s4 + $0x18] sm:$0x3f]  ;;  %p776_p1 = pneg %p775_p0  ;;  %p781_p3 = scmp.lt.s32.totalorder %s779_s6, %s773_s20 }
  0x27   : > { %706 = vmatpush3.bf16.msra.mxu0 %v763_v7  ;;  %v455_v15 = vld [vmem:[%s1039_s4 + $0x8] sm:$0xff]  ;;  %v547_v18 = vld [vmem:[%s1040_s5] sm:$0xff]  ;;  %v549_v20 = vld [vmem:[%s1040_s5 + $0x10] sm:$0xff] }
  0x28   : > { %707 = vmatprep.subr.bf16.mxu0 %v764_v9  ;;  %v548_v19 = vld [vmem:[%s1040_s5 + $0x8] sm:$0xff]  ;;  %v550_v21 = vld [vmem:[%s1040_s5 + $0x18] sm:$0x3f]  ;;  %v586_v22 = vld [vmem:[#allocation2] sm:$0x1]  ;;  %p782_p4 = por %p781_p3, %p780_p2 }
  0x29   : > { %363 = vperm.xlu0 %761, %v345_v10   ;;  %v767_v23 = vld [vmem:[%s1038_s3] sm:$0xff]   ;;  %v768_v42 = vld [vmem:[%s1038_s3 + $0x8] sm:$0x7f]  }
  0x2a   : > { %353 = vperm.xlu1 %762, %v343_v12   ;;  %717 = vmatprep.mubr.msk.bf16.mxu1 %vm388_vm0, %v767_v23  ;;  %p783_p5 = pnand %p782_p4, %p776_p1 }
  0x2b   : > { %708 = vmatpush3.bf16.msra.mxu0 %v764_v9  ;;  %v593_v9 = vshrl.u32 %v592_v6, 7 }
  0x2d   : > { %460 = vperm.xlu0 %761, %v454_v14   ;;  %v594_v12 = vsub.s32 0, %v593_v9 }
  0x2e   : > { %710 = vmatmul.mubr.msk.bf16.vlgmr.msra.gmra.mxu0 %vm388_vm0, %v766_v13  ;;  %465 = vperm.xlu1 %762, %v455_v15  }
  0x31   : > { %470 = vperm.xlu0 %761, %v456_v16  }
  0x32   : > { %475 = vperm.xlu1 %762, %v457_v17  }
  0x35   : > { %553 = vperm.xlu0 %761, %v547_v18  }
  0x36   : > { %558 = vperm.xlu1 %762, %v548_v19  }
  0x39   : > { %563 = vperm.xlu0 %761, %v549_v20  }
  0x3a   : > { %568 = vperm.xlu1 %762, %v550_v21  }
  0x3d   : > { %589 = vperm.xlu0 %761, %v586_v22  }
  0xa0   : > { %v359_v24 = vpop.permute.xlu0 %358 }
  0xa1   : > { %v349_v25 = vpop.permute.xlu1 %348 }
  0xa4   : > { %v364_v29 = vpop.permute.xlu0 %363 }
  0xa5   : > { %v354_v33 = vpop.permute.xlu1 %353 }
  0xa8   : > { %v461_v44 = vpop.permute.xlu0 %460 }
  0xa9   : > { %v466_v43 = vpop.permute.xlu1 %465 }
  0xac   : > { %v471_v46 = vpop.permute.xlu0 %470 }
  0xad   : > { %v476_v45 = vpop.permute.xlu1 %475 }
  0xb0   : > { %v554_v54 = vpop.permute.xlu0 %553 }
  0xb1   : > { %v559_v51 = vpop.permute.xlu1 %558 }
  0xb4   : > { %v564_v0 = vpop.permute.xlu0 %563 }
  0xb5   : > { %v569_v61 = vpop.permute.xlu1 %568 }
  0xb8   : > { %v590_v14 = vpop.permute.xlu0 %589 }
  0xb9   : > { %v595_v16 = vrot.slane %v590_v14, %v594_v12 }
  0xee   : > { %v711_v26 = vpop.f32.mrf.mxu0 }
  0xef   : > { %v438_v28 = vadd.f32 %v711_v26, %v359_v24 }
  0xf0   : > { %v429_v27 = vpop.f32.mrf.mxu0 }
  0xf1   : > { %v430_v31 = vadd.f32 %v429_v27, %v349_v25  ;;  %v446_v35 = vmax.f32 %v438_v28, 0.0 }
  0xf2   : > { %v712_v30 = vpop.f32.mrf.mxu0 }
  0xf3   : > { %v441_v32 = vadd.f32 %v712_v30, %v364_v29  ;;  %v444_v38 = vmax.f32 %v430_v31, 0.0 }
  0xf4   : > { %v432_v34 = vpop.f32.mrf.mxu0 }
  0xf5   : > { %v447_v36 = vmax.f32 %v441_v32, 0.0  ;;  %v433_v37 = vadd.f32 %v432_v34, %v354_v33 }
  0xf7   : > { %v445_v39 = vmax.f32 %v433_v37, 0.0  ;;  %v453_v40 = vpack.c.bf16 %v447_v36, %v446_v35 }
  0xf9   : > { %v452_v41 = vpack.c.bf16 %v445_v39, %v444_v38  ;;  %713 = vmatprep.subr.bf16.mxu1 %v453_v40 }
  0xfa   : > { %714 = vmatpush3.bf16.msra.mxu1 %v453_v40 }
  0xfb   : > { %715 = vmatprep.subr.bf16.mxu1 %v452_v41 }
  0xfe   : > { %716 = vmatpush3.bf16.msra.mxu1 %v452_v41 }
 0x101   : > { %718 = vmatmul.mubr.msk.bf16.vlgmr.msra.gmra.mxu1 %vm388_vm0, %v768_v42 }
 0x1c1   : > { %v719_v47 = vpop.f32.mrf.mxu1 }
 0x1c2   : > { %v537_v52 = vadd.f32 %v719_v47, %v471_v46 }
 0x1c3   : > { %v528_v48 = vpop.f32.mrf.mxu1 }
 0x1c4   : > { %v529_v49 = vadd.f32 %v528_v48, %v461_v44  ;;  %v545_v59 = vmax.f32 %v537_v52, 0.0 }
 0x1c5   : > { %v720_v50 = vpop.f32.mrf.mxu1 }
 0x1c6   : > { %v540_v53 = vadd.f32 %v720_v50, %v476_v45  ;;  %v543_v56 = vmax.f32 %v529_v49, 0.0  ;;  %v573_v2 = vmul.f32 %v564_v0, %v545_v59 }
 0x1c7   : > { %v531_v55 = vpop.f32.mrf.mxu1 }
 0x1c8   : > { %v532_v57 = vadd.f32 %v531_v55, %v466_v43  ;;  %v546_v58 = vmax.f32 %v540_v53, 0.0  ;;  %v571_v62 = vmul.f32 %v554_v54, %v543_v56 }
 0x1ca   : > { %v544_v60 = vmax.f32 %v532_v57, 0.0  ;;  %v574_v1 = vmul.f32 %v569_v61, %v546_v58 }
 0x1cc   : > { %v572_v63 = vmul.f32 %v559_v51, %v544_v60  ;;  %v578_v5 = vsel %vm577_vm1, %v574_v1, 0.0 }
 0x1ce   : > { %v575_v3 = vadd.f32 %v572_v63, %v571_v62 }
 0x1d0   : > { %v576_v4 = vadd.f32 %v575_v3, %v573_v2 }
 0x1d2   : > { %v579_v7 = vadd.f32 %v578_v5, %v576_v4 }
 0x1d4   : > { %v580_v8 = vrot.slane %v579_v7, 4 }
 0x1d6   : > { %v581_v10 = vadd.f32 %v580_v8, %v579_v7 }
 0x1d8   : > { %v582_v11 = vrot.slane %v581_v10, 2 }
 0x1da   : > { %v583_v13 = vadd.f32 %v582_v11, %v581_v10 }
 0x1dc   : > { %v584_v15 = vrot.slane %v583_v13, 1 }
 0x1de   : > { %v585_v17 = vadd.f32 %v584_v15, %v583_v13 }
 0x1e0   : > { %v596_v18 = vadd.f32 %v595_v16, %v585_v17 }
 0x1e2   : > { %v597_v19 = vsub.f32 0.0, %v596_v18 }
 0x1e4   : > { %v598_v20 = vmul.f32 1.442695, %v597_v19 }
 0x1e6   : > { %769 = vpow2.f32 %v598_v20 }
 0x1f3   : > { %v770_v21 = vpop.eup %769 }
 0x1f4   : > { %v600_v22 = vadd.f32 1.0, %v770_v21 }
 0x1f6   : > { %771 = vrcp.f32 %v600_v22 }
 0x203   : > { %v772_v23 = vpop.eup %771 }
 0x204   : > { %602 = vst [vmem:[%s332_s14] sm:$0x1] %v772_v23 }
 0x205   : > { %786 = shalt.err (!%p783_p5)
}
 0x206   : > { %s787_s24 = scalar_lea.hbm %s998_s18, 16  ;;  %s791_s30 = scalar_lea.hbm %s1042_s7, 32 }
 0x207   : > { %p788_p7 = scmp.ne.s32.totalorder %s998_s18, %s787_s24  ;;  %p792_p12 = scmp.lt.s32.totalorder %s998_s18, %s1042_s7 }
 0x208   : > { %p793_p13 = scmp.lt.s32.totalorder %s791_s30, %s787_s24 }
 0x209   : > { %p789_p10 = pnand %p788_p7, %p918_p6 }
 0x20a   : > { %p794_p0 = por %p793_p13, %p792_p12 }
 0x20b   : > { %p790_p11 = pneg %p789_p10 }
 0x20d   : > { %p795_p1 = pnand %p794_p0, %p790_p11 }
 0x20f   : > { %798 = shalt.err (!%p795_p1)
}
 0x210   : > { %721 = dma.vmem_to_hbm [thread:$0]  (%p918_p6), %s617_s15, 16, %s998_s18, %s604_s19  }
 0x211 PF: > { %s628_s14 = sand.u32 1, %s821_s26   ;;  %p724_p2 = pnand %p679_p9, %p922_p8 }
 0x212   : > { %s629_s16 = scalar_lea.sflag [#allocation5], %s628_s14 }
 0x213   : > { %p725_p3 = pneg %p724_p2 }
 0x215   : > { %816 = dma.done.wait (%p725_p3), %s629_s16, 16  }
 0x216   : > { %818 = vsyncadd (%p725_p3), %s629_s16, 4294967280  ;;  %p19_p4 = scmp.ge.s32.totalorder %s903_s8, 4   ;;  %s1045_s26 = smov %s825_s27 }
 0x217   : > { %s1046_s27 = smov %s829_s28  ;;  %s1047_s28 = smov %s916_s11 }
 0x218   : > { %s1048_s29 = smov %s903_s8  ;;  %21 = sbr.rel (!%p19_p4) target bundleno = 6 (0x6), region = 129 }
 0x21d   :  { %633 = vsyncpa [#allocation5], 1 }
 0x21e   :  { %635 = vsyncpa [#allocation5 + $0x1], 1 }

</bundles_post_ra>
